<compile_context>
chip_gen: v7x
topology: tpu7x:2x2x1
jax: 0.10.0
libtpu: 0.0.40
codegen_flags: <defaults>
</compile_context>

<pallas_src>
import functools

import jax
import jax.numpy as jnp
from jax import lax
from jax.experimental import pallas as pl
from jax.experimental.pallas import tpu as pltpu

_LANES = 128


def _to_rgb_kernel(x_ref, w_ref, b_ref, o_ref, *, c_in, c_out, chunk, n_chunks,
                   clamp):
    # x_ref : VMEM [c_in,  tile_rows, 128]   (dense [rows,128] slab per channel)
    # w_ref : SMEM [c_out * c_in]            (weight_gain already folded in)
    # b_ref : SMEM [c_out]
    # o_ref : VMEM [c_out, tile_rows, 128]

    def do_chunk(r0):
        # Hoist the c_in input chunks only within this small chunk
        # (chunk <= 32 rows -> <= 4 vregs each, live set stays small).
        xs = [x_ref[k, pl.ds(r0, chunk), :].astype(jnp.float32)
              for k in range(c_in)]
        for c in range(c_out):                     # fully unrolled: tiny extents
            acc = xs[0] * w_ref[c * c_in + 0]
            for k in range(1, c_in):
                acc = acc + xs[k] * w_ref[c * c_in + k]
            acc = acc + b_ref[c]
            acc = jnp.minimum(jnp.maximum(acc, -clamp), clamp)
            o_ref[c, pl.ds(r0, chunk), :] = acc.astype(o_ref.dtype)

    if n_chunks == 1:
        do_chunk(0)
    else:
        def body(i, carry):
            do_chunk(pl.multiple_of(i * chunk, chunk))
            return carry
        lax.fori_loop(0, n_chunks, body, 0)


def to_rgb_layer1(x_nchw, weight, bias, _w_latent=None, *, weight_gain,
                  conv_clamp=256.0, target_rows=2048):
    """Pallas equivalent of ToRGBLayer1.forward (kernel_size=1).

    x_nchw : [N, Cin, H, W] (f32 or bf16)
    weight : [Cout, Cin, 1, 1]
    bias   : [Cout]
    _w_latent is accepted (and ignored) to mirror the PyTorch forward signature.
    """
    N, Cin, H, W = x_nchw.shape
    Cout = weight.shape[0]
    HW = H * W

    # --- Lane-dense spatial view: [N, Cin, HW] -> [N, Cin, R, 128] ------------
    pad = (-HW) % _LANES
    x_flat = x_nchw.reshape(N, Cin, HW)
    if pad:
        # TODO(synk): the pad costs one extra HBM pass; produce HW % 128 == 0
        # activations upstream (or carry the padded layout through) to avoid it.
        x_flat = jnp.pad(x_flat, ((0, 0), (0, 0), (0, pad)))
    HWp = HW + pad
    R = HWp // _LANES
    x4d = x_flat.reshape(N, Cin, R, _LANES)        # contiguous -> free reshape

    # Fold weight_gain into the tiny weight outside the kernel (free); scalars
    # go to SMEM in f32.
    w_flat = (weight.reshape(Cout, Cin).astype(jnp.float32)
              * jnp.float32(weight_gain)).reshape(Cout * Cin)
    b1d = bias.reshape(Cout).astype(jnp.float32)

    # --- Tiling ---------------------------------------------------------------
    # Whole spatial extent if small; otherwise 2048 rows (= 256K positions per
    # step, ~7 MiB HBM traffic, ~14 MiB double-buffered VMEM).  Trailing partial
    # blocks are handled by Pallas (masked writeback).
    tile_rows = R if R <= target_rows else target_rows

    if tile_rows % 8 == 0:
        chunk = 32 if tile_rows % 32 == 0 else (16 if tile_rows % 16 == 0 else 8)
    else:
        chunk = tile_rows                          # small/odd tiles: one chunk
    n_chunks = tile_rows // chunk

    grid = (N, pl.cdiv(R, tile_rows))

    itemsize = jnp.dtype(x_nchw.dtype).itemsize
    cost = pl.CostEstimate(
        flops=2 * N * HWp * Cin * Cout,
        transcendentals=0,
        bytes_accessed=itemsize * N * HWp * (Cin + Cout) + 4 * (Cout * Cin + Cout),
    )

    out4d = pl.pallas_call(
        functools.partial(_to_rgb_kernel, c_in=Cin, c_out=Cout, chunk=chunk,
                          n_chunks=n_chunks, clamp=float(conv_clamp)),
        out_shape=jax.ShapeDtypeStruct((N, Cout, R, _LANES), x_nchw.dtype),
        grid=grid,
        in_specs=[
            pl.BlockSpec((None, Cin, tile_rows, _LANES),
                         lambda n, s: (n, 0, s, 0)),                 # activations
            pl.BlockSpec(memory_space=pltpu.MemorySpace.SMEM),       # weights
            pl.BlockSpec(memory_space=pltpu.MemorySpace.SMEM),       # bias
        ],
        out_specs=pl.BlockSpec((None, Cout, tile_rows, _LANES),
                               lambda n, s: (n, 0, s, 0)),
        compiler_params=pltpu.CompilerParams(
            dimension_semantics=("parallel", "parallel"),
        ),
        cost_estimate=cost,
    )(x4d, w_flat, b1d)

    out = out4d.reshape(N, Cout, HWp)
    if pad:
        out = out[:, :, :HW]
    return out.reshape(N, Cout, H, W)              # contiguous -> free reshape


if __name__ == "__main__":
    # Module config (small, consistent with the forward pass).
    N, Cin, H, W = 2, 4, 16, 16
    Cout = 3
    w_dim = 8
    kernel_size = 1
    weight_gain = 1.0 / float(Cin * kernel_size ** 2) ** 0.5

    key = jax.random.PRNGKey(0)
    kx, kw, klatent = jax.random.split(key, 3)

    weight = jax.random.normal(kw, (Cout, Cin, kernel_size, kernel_size),
                               jnp.float32)
    bias = jnp.zeros((Cout,), jnp.float32)

    x = jax.random.normal(kx, (N, Cin, H, W), jnp.float32)
    w_latent = jax.random.normal(klatent, (N, w_dim), jnp.float32)  # unused, as in forward

    out = to_rgb_layer1(x, weight, bias, w_latent, weight_gain=weight_gain)
    jax.block_until_ready(out)

    # Plain-JAX reference (1x1 conv == channel einsum) to validate semantics.
    w_scaled = weight.reshape(Cout, Cin) * weight_gain
    ref = jnp.einsum("nchw,oc->nohw", x, w_scaled) + bias[None, :, None, None]
    ref = jnp.clip(ref, -256.0, 256.0)

    assert out.shape == (N, Cout, H, W)
    assert jnp.allclose(out, ref, atol=1e-4, rtol=1e-4)

    print("KERNEL_OK")
</pallas_src>

<mosaic_0001>
module attributes {stable_mosaic.version = 11 : i64} {
  func.func @_to_rgb_kernel(%arg0: i32, %arg1: i32, %arg2: memref<1x4x2x128xf32, #tpu.memory_space<vmem>>, %arg3: memref<12xf32, #tpu.memory_space<smem>>, %arg4: memref<3xf32, #tpu.memory_space<smem>>, %arg5: memref<1x3x2x128xf32, #tpu.memory_space<vmem>>) attributes {dimension_semantics = [#tpu.dimension_semantics<parallel>, #tpu.dimension_semantics<parallel>], iteration_bounds = array<i64: 2, 1>, scalar_prefetch = 0 : i64, scratch_operands = 0 : i64, tpu.core_type = #tpu.core_type<tc>, window_params = [{transform_indices = @transform_0, window_bounds = array<i64: 1, 4, 2, 128>}, {transform_indices = @transform_1, window_bounds = array<i64: 12>}, {transform_indices = @transform_2, window_bounds = array<i64: 3>}, {transform_indices = @transform_3, window_bounds = array<i64: 1, 3, 2, 128>}]} {
    %c0 = arith.constant 0 : index
    %c0_0 = arith.constant 0 : index
    %c0_1 = arith.constant 0 : index
    %c0_2 = arith.constant 0 : index
    %0 = vector.load %arg2[%c0, %c0_0, %c0_1, %c0_2] : memref<1x4x2x128xf32, #tpu.memory_space<vmem>>, vector<1x1x2x128xf32>
    %1 = vector.shape_cast %0 : vector<1x1x2x128xf32> to vector<2x128xf32>
    %c0_3 = arith.constant 0 : index
    %c1 = arith.constant 1 : index
    %c0_4 = arith.constant 0 : index
    %c0_5 = arith.constant 0 : index
    %2 = vector.load %arg2[%c0_3, %c1, %c0_4, %c0_5] : memref<1x4x2x128xf32, #tpu.memory_space<vmem>>, vector<1x1x2x128xf32>
    %3 = vector.shape_cast %2 : vector<1x1x2x128xf32> to vector<2x128xf32>
    %c0_6 = arith.constant 0 : index
    %c2 = arith.constant 2 : index
    %c0_7 = arith.constant 0 : index
    %c0_8 = arith.constant 0 : index
    %4 = vector.load %arg2[%c0_6, %c2, %c0_7, %c0_8] : memref<1x4x2x128xf32, #tpu.memory_space<vmem>>, vector<1x1x2x128xf32>
    %5 = vector.shape_cast %4 : vector<1x1x2x128xf32> to vector<2x128xf32>
    %c0_9 = arith.constant 0 : index
    %c3 = arith.constant 3 : index
    %c0_10 = arith.constant 0 : index
    %c0_11 = arith.constant 0 : index
    %6 = vector.load %arg2[%c0_9, %c3, %c0_10, %c0_11] : memref<1x4x2x128xf32, #tpu.memory_space<vmem>>, vector<1x1x2x128xf32>
    %7 = vector.shape_cast %6 : vector<1x1x2x128xf32> to vector<2x128xf32>
    %c0_12 = arith.constant 0 : index
    %8 = memref.load %arg3[%c0_12] : memref<12xf32, #tpu.memory_space<smem>>
    %9 = vector.broadcast %8 : f32 to vector<2x128xf32>
    %10 = arith.mulf %1, %9 : vector<2x128xf32>
    %c1_13 = arith.constant 1 : index
    %11 = memref.load %arg3[%c1_13] : memref<12xf32, #tpu.memory_space<smem>>
    %12 = vector.broadcast %11 : f32 to vector<2x128xf32>
    %13 = arith.mulf %3, %12 : vector<2x128xf32>
    %14 = arith.addf %10, %13 : vector<2x128xf32>
    %c2_14 = arith.constant 2 : index
    %15 = memref.load %arg3[%c2_14] : memref<12xf32, #tpu.memory_space<smem>>
    %16 = vector.broadcast %15 : f32 to vector<2x128xf32>
    %17 = arith.mulf %5, %16 : vector<2x128xf32>
    %18 = arith.addf %14, %17 : vector<2x128xf32>
    %c3_15 = arith.constant 3 : index
    %19 = memref.load %arg3[%c3_15] : memref<12xf32, #tpu.memory_space<smem>>
    %20 = vector.broadcast %19 : f32 to vector<2x128xf32>
    %21 = arith.mulf %7, %20 : vector<2x128xf32>
    %22 = arith.addf %18, %21 : vector<2x128xf32>
    %c0_16 = arith.constant 0 : index
    %23 = memref.load %arg4[%c0_16] : memref<3xf32, #tpu.memory_space<smem>>
    %24 = vector.broadcast %23 : f32 to vector<2x128xf32>
    %25 = arith.addf %22, %24 : vector<2x128xf32>
    %cst = arith.constant -2.560000e+02 : f32
    %26 = vector.broadcast %cst : f32 to vector<2x128xf32>
    %27 = arith.maximumf %25, %26 : vector<2x128xf32>
    %cst_17 = arith.constant 2.560000e+02 : f32
    %28 = vector.broadcast %cst_17 : f32 to vector<2x128xf32>
    %29 = arith.minimumf %27, %28 : vector<2x128xf32>
    %c0_18 = arith.constant 0 : index
    %c0_19 = arith.constant 0 : index
    %c0_20 = arith.constant 0 : index
    %c0_21 = arith.constant 0 : index
    %30 = vector.load %arg5[%c0_18, %c0_19, %c0_20, %c0_21] : memref<1x3x2x128xf32, #tpu.memory_space<vmem>>, vector<1x1x2x128xf32>
    %31 = vector.shape_cast %30 : vector<1x1x2x128xf32> to vector<2x128xf32>
    %32 = vector.shape_cast %29 : vector<2x128xf32> to vector<1x1x2x128xf32>
    tpu.vector_store %arg5[%c0_18, %c0_19, %c0_20, %c0_21], %32 {strides = array<i32>} : memref<1x3x2x128xf32, #tpu.memory_space<vmem>>, vector<1x1x2x128xf32>,
    %c4 = arith.constant 4 : index
    %33 = memref.load %arg3[%c4] : memref<12xf32, #tpu.memory_space<smem>>
    %34 = vector.broadcast %33 : f32 to vector<2x128xf32>
    %35 = arith.mulf %1, %34 : vector<2x128xf32>
    %c5 = arith.constant 5 : index
    %36 = memref.load %arg3[%c5] : memref<12xf32, #tpu.memory_space<smem>>
    %37 = vector.broadcast %36 : f32 to vector<2x128xf32>
    %38 = arith.mulf %3, %37 : vector<2x128xf32>
    %39 = arith.addf %35, %38 : vector<2x128xf32>
    %c6 = arith.constant 6 : index
    %40 = memref.load %arg3[%c6] : memref<12xf32, #tpu.memory_space<smem>>
    %41 = vector.broadcast %40 : f32 to vector<2x128xf32>
    %42 = arith.mulf %5, %41 : vector<2x128xf32>
    %43 = arith.addf %39, %42 : vector<2x128xf32>
    %c7 = arith.constant 7 : index
    %44 = memref.load %arg3[%c7] : memref<12xf32, #tpu.memory_space<smem>>
    %45 = vector.broadcast %44 : f32 to vector<2x128xf32>
    %46 = arith.mulf %7, %45 : vector<2x128xf32>
    %47 = arith.addf %43, %46 : vector<2x128xf32>
    %c1_22 = arith.constant 1 : index
    %48 = memref.load %arg4[%c1_22] : memref<3xf32, #tpu.memory_space<smem>>
    %49 = vector.broadcast %48 : f32 to vector<2x128xf32>
    %50 = arith.addf %47, %49 : vector<2x128xf32>
    %cst_23 = arith.constant -2.560000e+02 : f32
    %51 = vector.broadcast %cst_23 : f32 to vector<2x128xf32>
    %52 = arith.maximumf %50, %51 : vector<2x128xf32>
    %cst_24 = arith.constant 2.560000e+02 : f32
    %53 = vector.broadcast %cst_24 : f32 to vector<2x128xf32>
    %54 = arith.minimumf %52, %53 : vector<2x128xf32>
    %c0_25 = arith.constant 0 : index
    %c1_26 = arith.constant 1 : index
    %c0_27 = arith.constant 0 : index
    %c0_28 = arith.constant 0 : index
    %55 = vector.load %arg5[%c0_25, %c1_26, %c0_27, %c0_28] : memref<1x3x2x128xf32, #tpu.memory_space<vmem>>, vector<1x1x2x128xf32>
    %56 = vector.shape_cast %55 : vector<1x1x2x128xf32> to vector<2x128xf32>
    %57 = vector.shape_cast %54 : vector<2x128xf32> to vector<1x1x2x128xf32>
    tpu.vector_store %arg5[%c0_25, %c1_26, %c0_27, %c0_28], %57 {strides = array<i32>} : memref<1x3x2x128xf32, #tpu.memory_space<vmem>>, vector<1x1x2x128xf32>,
    %c8 = arith.constant 8 : index
    %58 = memref.load %arg3[%c8] : memref<12xf32, #tpu.memory_space<smem>>
    %59 = vector.broadcast %58 : f32 to vector<2x128xf32>
    %60 = arith.mulf %1, %59 : vector<2x128xf32>
    %c9 = arith.constant 9 : index
    %61 = memref.load %arg3[%c9] : memref<12xf32, #tpu.memory_space<smem>>
    %62 = vector.broadcast %61 : f32 to vector<2x128xf32>
    %63 = arith.mulf %3, %62 : vector<2x128xf32>
    %64 = arith.addf %60, %63 : vector<2x128xf32>
    %c10 = arith.constant 10 : index
    %65 = memref.load %arg3[%c10] : memref<12xf32, #tpu.memory_space<smem>>
    %66 = vector.broadcast %65 : f32 to vector<2x128xf32>
    %67 = arith.mulf %5, %66 : vector<2x128xf32>
    %68 = arith.addf %64, %67 : vector<2x128xf32>
    %c11 = arith.constant 11 : index
    %69 = memref.load %arg3[%c11] : memref<12xf32, #tpu.memory_space<smem>>
    %70 = vector.broadcast %69 : f32 to vector<2x128xf32>
    %71 = arith.mulf %7, %70 : vector<2x128xf32>
    %72 = arith.addf %68, %71 : vector<2x128xf32>
    %c2_29 = arith.constant 2 : index
    %73 = memref.load %arg4[%c2_29] : memref<3xf32, #tpu.memory_space<smem>>
    %74 = vector.broadcast %73 : f32 to vector<2x128xf32>
    %75 = arith.addf %72, %74 : vector<2x128xf32>
    %cst_30 = arith.constant -2.560000e+02 : f32
    %76 = vector.broadcast %cst_30 : f32 to vector<2x128xf32>
    %77 = arith.maximumf %75, %76 : vector<2x128xf32>
    %cst_31 = arith.constant 2.560000e+02 : f32
    %78 = vector.broadcast %cst_31 : f32 to vector<2x128xf32>
    %79 = arith.minimumf %77, %78 : vector<2x128xf32>
    %c0_32 = arith.constant 0 : index
    %c2_33 = arith.constant 2 : index
    %c0_34 = arith.constant 0 : index
    %c0_35 = arith.constant 0 : index
    %80 = vector.load %arg5[%c0_32, %c2_33, %c0_34, %c0_35] : memref<1x3x2x128xf32, #tpu.memory_space<vmem>>, vector<1x1x2x128xf32>
    %81 = vector.shape_cast %80 : vector<1x1x2x128xf32> to vector<2x128xf32>
    %82 = vector.shape_cast %79 : vector<2x128xf32> to vector<1x1x2x128xf32>
    tpu.vector_store %arg5[%c0_32, %c2_33, %c0_34, %c0_35], %82 {strides = array<i32>} : memref<1x3x2x128xf32, #tpu.memory_space<vmem>>, vector<1x1x2x128xf32>,
    return
  }
  func.func @transform_0(%arg0: i32, %arg1: i32) -> (i32, i32, i32, i32) {
    %c0_i32 = arith.constant 0 : i32
    %c0_i32_0 = arith.constant 0 : i32
    %c0_i32_1 = arith.constant 0 : i32
    return %arg0, %c0_i32, %arg1, %c0_i32_0 : i32, i32, i32, i32
  }
  func.func @transform_1(%arg0: i32, %arg1: i32) -> i32 {
    %c0_i32 = arith.constant 0 : i32
    %c0_i32_0 = arith.constant 0 : i32
    return %c0_i32 : i32
  }
  func.func @transform_2(%arg0: i32, %arg1: i32) -> i32 {
    %c0_i32 = arith.constant 0 : i32
    %c0_i32_0 = arith.constant 0 : i32
    return %c0_i32 : i32
  }
  func.func @transform_3(%arg0: i32, %arg1: i32) -> (i32, i32, i32, i32) {
    %c0_i32 = arith.constant 0 : i32
    %c0_i32_0 = arith.constant 0 : i32
    %c0_i32_1 = arith.constant 0 : i32
    return %arg0, %c0_i32, %arg1, %c0_i32_0 : i32, i32, i32, i32
  }
}

</mosaic_0001>

<bundles_post_ra>
// kernel: tpu_custom_call.1
= control target key start
LH: loop header
LB: loop body
LE: loop exit
PB: predicated region body
PF: predicated region fallthrough
CT: control target
= control target key end

     0   :  { %8 = vsyncpa [#allocation3], 0  ;;  %s962_s0 = inlined_call_operand.hbm [shape: f32[2,4,2,128], index: 0, kind: input, shape index: {}]   ;;  %s963_s1 = inlined_call_operand.vmem [shape: f32[12], index: 1, kind: input, shape index: {}]   ;;  %s964_s2 = inlined_call_operand.vmem [shape: f32[3], index: 2, kind: input, shape index: {}]   ;;  %s965_s3 = inlined_call_operand.hbm [shape: f32[2,3,2,128], index: 3, kind: output, shape index: {}]  }
   0x1   :  { %10 = vsyncpa [#allocation3 + $0x1], 0 }
   0x2   :  { %11 = vsyncpa [#allocation5], 0 }
   0x3   :  { %12 = vsyncpa [#allocation8], 0 }
   0x4   :  { %13 = vsyncpa [#allocation4], 0 }
   0x5   :  { %15 = vsyncpa [#allocation4 + $0x1], 0  ;;  %s734_s12 = smov 0   ;;  %s736_s13 = smov 0  }
   0x6   :  { %s738_s14 = smov 0   ;;  %s740_s15 = smov 0  }
   0x7   :  { %s742_s16 = smov 0   ;;  %s744_s17 = smov 0  }
   0x8 LB: > { %s427_s18 = sadd.s32 4294967295, %s704_s17   ;;  %s428_s19 = sadd.s32 4294967294, %s704_s17   ;;  %s704_s17 = sphi %s744_s17, %s21_s17   ;;  %s700_s16 = sphi %s742_s16, %s991_s16   ;;  %s696_s15 = sphi %s740_s15, %s990_s15   ;;  %s692_s14 = sphi %s738_s14, %s989_s14   ;;  %s688_s13 = sphi %s736_s13, %s988_s13   ;;  %s684_s12 = sphi %s734_s12, %s987_s12  }
   0x9   : > { %s42_s20 = sadd.s32 1, %s692_s14  ;;  %p49_p0 = scmp.ne.s32.totalorder %s692_s14, %s688_s13 }
   0xa   : > { %p50_p1 = scmp.eq.s32.totalorder %s704_s17, 0  ;;  %p55_p2 = scmp.ne.s32.totalorder %s688_s13, %s684_s12 }
   0xb   : > { %p772_p3 = scmp.eq.s32.totalorder %s427_s18, 0  ;;  %p123_p4 = scmp.eq.s32.totalorder %s427_s18, 1 }
   0xc   : > { %p776_p5 = por %p50_p1, %p49_p0  ;;  %p129_p6 = scmp.eq.s32.totalorder %s428_s19, 1 }
   0xd   : > { %s972_s21 = scalar_select %p772_p3, 1, 0 }
   0xe   : > { %p782_p7 = por %p772_p3, %p55_p2  ;;  %p786_p8 = por %p123_p4, %p49_p0 }
   0xf   : > { %p790_p9 = por %p129_p6, %p55_p2  ;;  %p429_p10 = scmp.ge.s32.totalorder %s704_s17, 1 }
  0x10   : > { %s974_s23 = scalar_select %p782_p7, 1, 0 }
  0x11   : > { %s975_s24 = scalar_select %p786_p8, 1, 0 }
  0x12   : > { %s976_s25 = scalar_select %p790_p9, 1, 0 }
  0x13   : > { %p136_p11 = scmp.lt.s32.totalorder %s704_s17, 3  ;;  %s149_s28 = sshll.u32 %s963_s1, 4  ;;  %s150_s28 = int_to_ptr.vmem [resolvable:$true] %s149_s28 }
  0x14   : > { %p496_p0 = scmp.lt.s32.totalorder %s704_s17, 2  ;;  %s160_s5 = sshll.u32 %s964_s2, 4  ;;  %s161_s5 = int_to_ptr.vmem [resolvable:$true] %s160_s5 }
  0x15   : > { %p799_p12 = pnand %p429_p10, %p136_p11  ;;  %s554_s8 = scalar_lea.vmem %s150_s28, 16 }
  0x16   : > { %p812_p2 = pnand %p496_p0, %p776_p5  ;;  %p555_p6 = scmp.ne.s32.totalorder %s150_s28, %s554_s8 }
  0x17   : > { %s977_s29 = scalar_select %p799_p12, 1, 0 }
  0x18   : > { %p479_p1 = pneg %p799_p12  ;;  %p562_p9 = scmp.lt.s32.totalorder %s150_s28, %s150_s28 }
  0x19   : > { %s978_s6 = scalar_select %p812_p2, 1, 0 }
  0x1a   : > { %p818_p4 = pnand %p479_p1, %p772_p3  ;;  %p563_p8 = scmp.lt.s32.totalorder %s554_s8, %s554_s8 }
  0x1c   : > { %p556_p10 = pneg %p818_p4  ;;  %p564_p7 = por %p563_p8, %p562_p9 }
  0x1e   : > { %p557_p11 = pnand %p556_p10, %p555_p6 }
  0x20   : > { %p558_p13 = pneg %p557_p11 }
  0x22   : > { %p565_p5 = pnand %p564_p7, %p558_p13 }
  0x24   : > { %568 = shalt.err (!%p565_p5)
}
  0x25   : > { %s706_s9 = smov [#allocation6]   ;;  %s569_s10 = scalar_lea.vmem %s161_s5, 16 }
  0x26   : > { %482 = dma.vmem_to_smem (!%p818_p4), %s150_s28, 16, %s706_s9, [#allocation5]  }
  0x27   : > { %p570_p0 = scmp.ne.s32.totalorder %s161_s5, %s569_s10  ;;  %p577_p12 = scmp.lt.s32.totalorder %s161_s5, %s161_s5 }
  0x28   : > { %p578_p2 = scmp.lt.s32.totalorder %s569_s10, %s569_s10 }
  0x29   : > { %p572_p1 = pnand %p570_p0, %p556_p10 }
  0x2a   : > { %p579_p6 = por %p578_p2, %p577_p12 }
  0x2b   : > { %p573_p3 = pneg %p572_p1 }
  0x2d   : > { %p580_p11 = pnand %p579_p6, %p573_p3 }
  0x2f   : > { %583 = shalt.err (!%p580_p11)
}
  0x30   : > { %s707_s11 = smov [#allocation7]   ;;  %s33_s18 = sadd.s32 1, %s700_s16 }
  0x31   : > { %485 = dma.vmem_to_smem (!%p818_p4), %s161_s5, 16, %s707_s11, [#allocation8]  }
  0x32   : > { %s171_s19 = sand.u32 1, %s692_s14   ;;  %p35_p7 = scmp.ge.s32.totalorder %s33_s18, 2 }
  0x33   : > { %s433_s22 = sshll.u32 %s171_s19, 3  ;;  %s464_s26 = sshll.u32 %s700_s16, 7 }
  0x34   : > { %s993_s18 = smov (%p35_p7, %s33_s18), 0  ;;  %s836_s30 = scalar_lea.hbm %s962_s0, %s464_s26 }
  0x35   : > { %s37_s4 = ssub.s32 %s700_s16, %s993_s18  ;;  %s175_s5 = scalar_lea.vmem [#allocation2], %s433_s22 }
  0x36   : > { %s183_s7 = sshll.u32 %s175_s5, 4  ;;  %p40_p3 = scmp.eq.s32.totalorder %s37_s4, 0  ;;  %s840_s7 = int_to_ptr.vmem [resolvable:$true] %s183_s7 }
  0x37   : > { %s847_s9 = scalar_lea.sflag [#allocation3], %s171_s19  ;;  %s584_s10 = scalar_lea.hbm %s836_s30, 128 }
  0x38   : > { %s845_s8 = scalar_select %p40_p3, %s692_s14, %s42_s20  }
  0x39   : > { %p585_p8 = scmp.ne.s32.totalorder %s836_s30, %s584_s10  ;;  %p980_p9 = scmp.ne.s32.totalorder %s978_s6, 0 }
  0x3a   : > { %s589_s22 = scalar_lea.hbm %s962_s0, 256  ;;  %p590_p4 = scmp.lt.u32.totalorder %s836_s30, %s962_s0 }
  0x3b   : > { %p586_p12 = pneg %p980_p9  ;;  %p591_p10 = scmp.lt.u32.totalorder %s589_s22, %s584_s10 }
  0x3c   : > { %p593_p0 = scmp.lt.u32.totalorder %s584_s10, %s836_s30 }
  0x3d   : > { %p587_p13 = pnand %p586_p12, %p585_p8  ;;  %p592_p5 = por %p591_p10, %p590_p4 }
  0x3f   : > { %p588_p2 = pneg %p587_p13  ;;  %p594_p1 = por %p593_p0, %p592_p5 }
  0x41   : > { %p595_p6 = pnand %p594_p1, %p588_p2 }
  0x43   : > { %598 = shalt.err (!%p595_p6)
}
  0x44   : > { %s599_s20 = scalar_lea.vmem %s840_s7, 128  ;;  %s708_s19 = smov [#allocation2]  }
  0x45   : > { %p600_p11 = scmp.ne.s32.totalorder %s840_s7, %s599_s20  ;;  %s604_s4 = sshll.u32 %s708_s19, 4  ;;  %s605_s4 = int_to_ptr.vmem [resolvable:$false] %s604_s4 }
  0x46   : > { %s606_s5 = scalar_lea.vmem %s605_s4, 256  ;;  %p607_p8 = scmp.lt.s32.totalorder %s840_s7, %s605_s4 }
  0x47   : > { %p602_p7 = pnand %p600_p11, %p586_p12  ;;  %p608_p13 = scmp.lt.s32.totalorder %s606_s5, %s599_s20 }
  0x49   : > { %p603_p3 = pneg %p602_p7  ;;  %p609_p4 = por %p608_p13, %p607_p8 }
  0x4b   : > { %p610_p10 = pnand %p609_p4, %p603_p3 }
  0x4d   : > { %613 = shalt.err (!%p610_p10)
}
  0x4e   : > { %s709_s10 = smov 32   ;;  %s710_s11 = smov 2  }
  0x4f   : > { %489 = dma.hbm_to_vmem [thread:$0]  (!%p980_p9), %s836_s30, 128, %s840_s7, %s847_s9, %s709_s10, %s709_s10, %s710_s11  }
  0x50   : > { %p981_p12 = scmp.ne.s32.totalorder %s977_s29, 0 }
  0x51   : > { %s878_s26 = sand.u32 (!%p981_p12), 1, %s688_s13   ;;  %p982_p2 = scmp.ne.s32.totalorder (!%p981_p12), %s974_s23, 0 }
  0x52   : > { %195 = sbr.rel (%p981_p12) target bundleno = 136 (0x88), region = 32  ;;  %s437_s22 = sshll.u32 (!%p981_p12), %s878_s26, 3 }
  0x53   : > { %s198_s27 = scalar_lea.sflag (!%p981_p12), [#allocation3], %s878_s26  ;;  %s201_s28 = scalar_lea.vmem (!%p981_p12), [#allocation2], %s437_s22 }
  0x59   : > { %667 = dma.done.wait (%p982_p2), %s198_s27, 128  }
  0x5a   : > { %669 = vsyncadd (%p982_p2), %s198_s27, 4294967168  ;;  %p983_p5 = scmp.ne.s32.totalorder %s972_s21, 0 }
  0x5c   : > { %671 = dma.done.wait (%p983_p5), [#allocation5], 16  }
  0x5d   : > { %673 = vsyncadd (%p983_p5), [#allocation5], 4294967280 }
  0x5e   : > { %675 = dma.done.wait (%p983_p5), [#allocation8], 16  }
  0x5f   : > { %677 = vsyncadd (%p983_p5), [#allocation8], 4294967280 }
  0x60   : > { %214 = sfence }
  0x61   : > { %s240_s29 = sld [smem:[#allocation6]]  ;;  %s443_s6 = sld [smem:[#allocation6 + $0x1]]  ;;  %v233_v0 = vld [vmem:[%s201_s28] sm:$0x3]  ;;  %v440_v1 = vld [vmem:[%s201_s28 + $0x2] sm:$0x3] }
  0x62   : > { %s444_s30 = sld [smem:[#allocation6 + $0x2]]  ;;  %s445_s7 = sld [smem:[#allocation6 + $0x3]]  ;;  %v441_v2 = vld [vmem:[%s201_s28 + $0x4] sm:$0x3]  ;;  %v442_v4 = vld [vmem:[%s201_s28 + $0x6] sm:$0x3] }
  0x63   : > { %s894_s23 = sld [smem:[#allocation7]]  ;;  %s447_s9 = sld [smem:[#allocation6 + $0x4]] }
  0x64   : > { %s448_s20 = sld [smem:[#allocation6 + $0x5]]  ;;  %s449_s19 = sld [smem:[#allocation6 + $0x6]] }
  0x65   : > { %s450_s4 = sld [smem:[#allocation6 + $0x7]]  ;;  %s454_s21 = sld [smem:[#allocation6 + $0x8]] }
  0x66   : > { %s455_s5 = sld [smem:[#allocation6 + $0x9]]  ;;  %s456_s10 = sld [smem:[#allocation6 + $0xa]] }
  0x67   : > { %v241_v3 = vstv %s240_s29  ;;  %v244_v6 = vstv %s443_s6  ;;  %s896_s11 = sld [smem:[#allocation6 + $0xb]]  ;;  %s898_s22 = sld [smem:[#allocation7 + $0x1]] }
  0x68   : > { %v242_v5 = vmul.f32 %v241_v3, %v233_v0  ;;  %v245_v7 = vmul.f32 %v440_v1, %v244_v6  ;;  %v248_v8 = vstv %s444_s30  ;;  %v252_v9 = vstv %s445_s7  ;;  %s900_s27 = sld [smem:[#allocation7 + $0x2]]  ;;  %s465_s28 = smul.u32 6, %s878_s26 }
  0x69   : > { %v249_v10 = vmul.f32 %v441_v2, %v248_v8  ;;  %v253_v12 = vmul.f32 %v442_v4, %v252_v9  ;;  %v262_v13 = vstv %s447_s9  ;;  %v256_v21 = vstv %s894_s23  ;;  %s466_s30 = smul.u32 96, %s696_s15  ;;  %p984_p0 = scmp.ne.s32.totalorder %s975_s24, 0 }
  0x6a   : > { %v246_v11 = vadd.f32 %v245_v7, %v242_v5  ;;  %v263_v14 = vmul.f32 %v262_v13, %v233_v0  ;;  %v265_v15 = vstv %s448_s20  ;;  %v269_v16 = vstv %s449_s19  ;;  %s232_s29 = scalar_lea.vmem [#allocation9], %s465_s28  ;;  %s306_s20 = scalar_lea.sflag [#allocation4], %s878_s26 }
  0x6b   : > { %v266_v18 = vmul.f32 %v440_v1, %v265_v15  ;;  %v270_v19 = vmul.f32 %v441_v2, %v269_v16  ;;  %v273_v20 = vstv %s450_s4  ;;  %v284_v23 = vstv %s454_s21  ;;  %s320_s6 = sshll.u32 %s232_s29, 4  ;;  %s913_s9 = scalar_lea.hbm %s965_s3, %s466_s30  ;;  %s908_s6 = int_to_ptr.vmem [resolvable:$true] %s320_s6 }
  0x6c   : > { %v250_v17 = vadd.f32 %v249_v10, %v246_v11  ;;  %v274_v22 = vmul.f32 %v442_v4, %v273_v20  ;;  %v287_v24 = vstv %s455_s5  ;;  %v285_v27 = vmul.f32 %v284_v23, %v233_v0  ;;  %s614_s19 = scalar_lea.vmem %s908_s6, 96  ;;  %s711_s15 = smov [#allocation9]  }
  0x6d   : > { %v267_v26 = vadd.f32 %v266_v18, %v263_v14  ;;  %v288_v28 = vmul.f32 %v440_v1, %v287_v24  ;;  %v291_v29 = vstv %s456_s10  ;;  %v295_v30 = vstv %s896_s11  ;;  %p615_p9 = scmp.ne.s32.totalorder %s908_s6, %s614_s19  ;;  %s618_s4 = sshll.u32 %s711_s15, 4  ;;  %s619_s4 = int_to_ptr.vmem [resolvable:$false] %s618_s4 }
  0x6e   : > { %v254_v25 = vadd.f32 %v253_v12, %v250_v17  ;;  %v292_v34 = vmul.f32 %v441_v2, %v291_v29  ;;  %v277_v35 = vstv %s898_s22  ;;  %v296_v36 = vmul.f32 %v442_v4, %v295_v30  ;;  %s620_s21 = scalar_lea.vmem %s619_s4, 192  ;;  %p621_p11 = scmp.lt.s32.totalorder %s908_s6, %s619_s4 }
  0x6f   : > { %v271_v32 = vadd.f32 %v270_v19, %v267_v26  ;;  %v289_v33 = vadd.f32 %v288_v28, %v285_v27  ;;  %v299_v40 = vstv %s900_s27  ;;  %p616_p1 = pnand %p615_p9, %p984_p0  ;;  %p622_p7 = scmp.lt.s32.totalorder %s620_s21, %s614_s19 }
  0x70   : > { %v257_v31 = vadd.f32 %v256_v21, %v254_v25 }
  0x71   : > { %v275_v38 = vadd.f32 %v274_v22, %v271_v32  ;;  %v293_v39 = vadd.f32 %v292_v34, %v289_v33  ;;  %p617_p6 = pneg %p616_p1  ;;  %p623_p3 = por %p622_p7, %p621_p11 }
  0x72   : > { %v446_v37 = vclamps-f32 %v257_v31, 256.0 }
  0x73   : > { %v278_v41 = vadd.f32 %v277_v35, %v275_v38  ;;  %v297_v42 = vadd.f32 %v296_v36, %v293_v39  ;;  %p624_p8 = pnand %p623_p3, %p617_p6 }
  0x74   : > { %260 = vst [vmem:[%s232_s29] sm:$0x3] %v446_v37 }
  0x75   : > { %v452_v43 = vclamps-f32 %v278_v41, 256.0  ;;  %v300_v44 = vadd.f32 %v299_v40, %v297_v42 }
  0x77   : > { %453 = vst [vmem:[%s232_s29 + $0x2] sm:$0x3] %v452_v43  ;;  %v459_v45 = vclamps-f32 %v300_v44, 256.0 }
  0x79   : > { %460 = vst [vmem:[%s232_s29 + $0x4] sm:$0x3] %v459_v45 }
  0x7a   : > { %627 = shalt.err (!%p624_p8)
}
  0x7b   : > { %s628_s5 = scalar_lea.hbm %s913_s9, 96  ;;  %s632_s22 = scalar_lea.hbm %s965_s3, 192 }
  0x7c   : > { %p629_p13 = scmp.ne.s32.totalorder %s913_s9, %s628_s5  ;;  %p633_p12 = scmp.lt.u32.totalorder %s913_s9, %s965_s3 }
  0x7d   : > { %p634_p2 = scmp.lt.u32.totalorder %s632_s22, %s628_s5  ;;  %p636_p9 = scmp.lt.u32.totalorder %s628_s5, %s913_s9 }
  0x7e   : > { %p630_p4 = pnand %p629_p13, %p984_p0 }
  0x7f   : > { %p635_p5 = por %p634_p2, %p633_p12 }
  0x80   : > { %p631_p10 = pneg %p630_p4 }
  0x81   : > { %p637_p1 = por %p636_p9, %p635_p5 }
  0x83   : > { %p638_p6 = pnand %p637_p1, %p631_p10 }
  0x85   : > { %641 = shalt.err (!%p638_p6)
}
  0x86   : > { %s712_s29 = smov 32   ;;  %s713_s30 = smov 2  }
  0x87   : > { %477 = dma.vmem_to_hbm [thread:$0]  (%p984_p0), %s908_s6, 96, %s913_s9, %s306_s20, %s712_s29, %s712_s29, %s713_s30  }
  0x88 PF: > { %s335_s7 = sand.u32 1, %s684_s12   ;;  %p985_p11 = scmp.ne.s32.totalorder %s976_s25, 0 }
  0x89   : > { %p986_p7 = scmp.ge.s32.totalorder %s704_s17, 2  ;;  %s336_s23 = scalar_lea.sflag [#allocation4], %s335_s7 }
  0x8b   : > { %p491_p3 = pnand %p986_p7, %p985_p11 }
  0x8d   : > { %679 = dma.done.wait (!%p491_p3), %s336_s23, 96  }
  0x8e   : > { %681 = vsyncadd (!%p491_p3), %s336_s23, 4294967200  ;;  %s21_s17 = sadd.s32 1, %s704_s17   ;;  %s987_s12 = smov %s688_s13 }
  0x8f   : > { %p18_p8 = scmp.ge.s32.totalorder %s21_s17, 4   ;;  %s988_s13 = smov %s692_s14 }
  0x90   : > { %s989_s14 = smov %s845_s8  ;;  %s990_s15 = smov %s700_s16 }
  0x91   : > { %s991_s16 = smov %s993_s18  ;;  %20 = sbr.rel (!%p18_p8) target bundleno = 8 (0x8), region = 91 }
  0x98   :  { %341 = vsyncpa [#allocation3], 1 }
  0x99   :  { %343 = vsyncpa [#allocation3 + $0x1], 1 }
  0x9a   :  { %344 = vsyncpa [#allocation4], 1 }
  0x9b   :  { %346 = vsyncpa [#allocation4 + $0x1], 1 }
  0x9c   :  { %347 = vsyncpa [#allocation5], 1 }
  0x9d   :  { %349 = vsyncpa [#allocation5 + $0x1], 1 }
  0x9e   :  { %350 = vsyncpa [#allocation8], 1 }

</bundles_post_ra>
